<compile_context>
chip_gen: v7x
topology: tpu7x:2x2x1
jax: 0.10.0
libtpu: 0.0.40
codegen_flags: <defaults>
</compile_context>

<pallas_src>
import jax
import jax.numpy as jnp
from jax.experimental import pallas as pl
from jax.experimental.pallas import tpu as pltpu

N_TAYLOR = 6  # truncation order of the heat-kernel Taylor series


def _arma_plus_kernel(a_ref, xT_ref, t_ref, w_ref, b_ref, o_ref, h_ref):
    """One (taylor_step s, column_tile i) grid point.

    a_ref : (Np, TN)         bf16  column tile of the normalized adjacency
    xT_ref: (F_in, Np)       f32   full transposed node features (VMEM resident)
    t_ref : (F_in, 1)        f32   per-channel diffusion time
    w_ref : (K, F_out, F_in) f32   fused (init + root) weights, transposed per stack
    b_ref : (K, F_out, 1)    f32   per-stack bias (transposed)
    o_ref : (F_out, TN)      f32   transposed output column tile (mean over stacks)
    h_ref : (2, F_in, Np)    f32   scratch: Horner ping-pong state
    """
    s = pl.program_id(0)                      # Taylor / Horner step
    i = pl.program_id(1)                      # output column tile
    last_s = pl.num_programs(0) - 1

    f_in, n_pad = xT_ref.shape
    tn = a_ref.shape[1]
    single_tile = (tn == n_pad)

    t = t_ref[...]                            # (F_in, 1)

    # Prime the Horner state with x once, at the very first grid point.
    @pl.when(jnp.logical_and(s == 0, i == 0))
    def _():
        h_ref[1, :, :] = xT_ref[...]

    read_slot = (s + 1) & 1                   # s = 0 reads slot 1 (= x)
    write_slot = s & 1

    # Horner step:  h_new = x + (t / k) * (h_prev @ A_tile),  k = N_TAYLOR - s.
    # A is symmetric, so h^T @ A == (A @ h)^T; the MXU output is lane-dense in N.
    h_prev = h_ref[read_slot]                                  # (F_in, Np)
    ah = jnp.dot(h_prev.astype(jnp.bfloat16), a_ref[...],
                 preferred_element_type=jnp.float32)           # (F_in, TN), f32 acc

    if single_tile:
        x_tile = xT_ref[...]
    else:
        c0 = pl.multiple_of(i * tn, tn)                        # 128-aligned lane slice
        x_tile = xT_ref[:, pl.ds(c0, tn)]

    kf = jnp.float32(N_TAYLOR) - s.astype(jnp.float32)
    h_new = x_tile + (t / kf) * ah                             # (F_in, TN)

    if single_tile:
        h_ref[write_slot] = h_new
    else:
        h_ref[write_slot, :, pl.ds(c0, tn)] = h_new

    # On the final Horner step this column tile of the diffused features is complete:
    # apply exp(-t) and run the fused ARMA stacks for the tile (lane-dense output).
    @pl.when(s == last_s)
    def _():
        xd = jnp.exp(-t) * h_new                               # (F_in, TN)
        n_stacks = w_ref.shape[0]
        acc = jnp.zeros((o_ref.shape[0], tn), jnp.float32)
        for k in range(n_stacks):                              # static, small K
            sk = jnp.dot(w_ref[k], xd,
                         preferred_element_type=jnp.float32)   # (F_out, TN)
            acc = acc + jnp.maximum(sk + b_ref[k], 0.0)
        o_ref[...] = (acc * (1.0 / n_stacks)).astype(o_ref.dtype)


def _pick_tiling(n):
    """Choose (TN, Np): lane-tile width for A/output columns and the padded N."""
    budget = 24 * 1024 * 1024                 # VMEM budget for bf16 A blocks (x2 buffers)
    if 2 * n * n <= budget:
        return n, n                           # A fully resident, single column tile
    for tn in (1024, 512, 256, 128):
        n_pad = ((n + tn - 1) // tn) * tn
        if 2 * n_pad * tn * 2 <= budget:      # double-buffered bf16 column tile
            return tn, n_pad
    # TODO(synk): for very large N the full-row column tiles no longer fit VMEM; a 2-D
    # tiling of A (extra contraction grid axis) would be needed.
    tn = 128
    return tn, ((n + tn - 1) // tn) * tn


def arma_plus_conv(x, edge_index, t, w_init, w_root, bias):
    """x: (N, F_in) f32, edge_index: (2, E) i32, t: (1, F_in),
    w_init/w_root: (K, F_in, F_out), bias: (K, 1, F_out). Returns (N, F_out) f32."""
    N, F_in = x.shape
    K, _, F_out = w_init.shape

    # ---- glue: dense symmetric-normalized adjacency with self loops, in bf16 ----
    A = jnp.zeros((N, N), jnp.float32).at[edge_index[0], edge_index[1]].max(1.0)
    A = jnp.maximum(A, A.T)                                # symmetrize, dedup edges
    A = jnp.maximum(A, jnp.eye(N, dtype=jnp.float32))      # self loops (idempotent)
    deg = A.sum(axis=1)
    dinv = jnp.where(deg > 0.0, 1.0 / jnp.sqrt(deg), 0.0)
    A_norm = (dinv[:, None] * A * dinv[None, :]).astype(jnp.bfloat16)

    # ---- feature-major (transposed) layout, padded to the lane-tile grid ----
    TN, Np = _pick_tiling(N)
    if Np != N:
        A_p = jnp.zeros((Np, Np), jnp.bfloat16).at[:N, :N].set(A_norm)
        x_p = jnp.zeros((Np, F_in), x.dtype).at[:N, :].set(x)
    else:
        A_p, x_p = A_norm, x
    xT = jnp.transpose(x_p)                                # (F_in, Np)
    tT = jnp.reshape(t, (F_in, 1))
    # dropout p = 0.0 is identity and the root term multiplies the *diffused* x here,
    # so init + root weights fuse into a single matmul per stack.
    w_fused = jnp.transpose(w_init + w_root, (0, 2, 1))    # (K, F_out, F_in)
    bT = jnp.swapaxes(bias, 1, 2)                          # (K, F_out, 1)

    n_tiles = Np // TN
    grid = (N_TAYLOR, n_tiles)

    # ---- VMEM budget: derive from footprint; never request the whole chip ----
    footprint = (2 * Np * TN * 2            # double-buffered bf16 A tiles
                 + F_in * Np * 4            # resident x^T
                 + 2 * F_in * Np * 4        # Horner ping-pong scratch
                 + 2 * F_out * TN * 4       # double-buffered output tiles
                 + (2 << 20))               # params + compiler scratch headroom
    try:
        vmem_cap = pltpu.get_tpu_info().vmem_capacity_bytes
    except Exception:
        vmem_cap = 64 * 1024 * 1024
    vmem_limit = int(min(max(int(footprint * 1.3), 16 << 20), int(vmem_cap * 0.85)))

    cost = pl.CostEstimate(
        flops=2 * N_TAYLOR * Np * Np * F_in + 2 * K * F_in * F_out * Np,
        transcendentals=F_in,
        bytes_accessed=N_TAYLOR * Np * Np * 2 + (F_in + F_out) * Np * 4,
    )

    out_T = pl.pallas_call(
        _arma_plus_kernel,
        out_shape=jax.ShapeDtypeStruct((F_out, Np), jnp.float32),
        grid_spec=pltpu.PrefetchScalarGridSpec(
            num_scalar_prefetch=0,
            grid=grid,
            in_specs=[
                pl.BlockSpec((Np, TN), lambda s, i: (0, i)),           # A column tile
                pl.BlockSpec((F_in, Np), lambda s, i: (0, 0)),         # x^T (resident)
                pl.BlockSpec((F_in, 1), lambda s, i: (0, 0)),          # t
                pl.BlockSpec((K, F_out, F_in), lambda s, i: (0, 0, 0)),  # fused W
                pl.BlockSpec((K, F_out, 1), lambda s, i: (0, 0, 0)),     # bias
            ],
            out_specs=pl.BlockSpec((F_out, TN), lambda s, i: (0, i)),
            scratch_shapes=[pltpu.VMEM((2, F_in, Np), jnp.float32)],
        ),
        compiler_params=pltpu.CompilerParams(
            # Both axes are sequential: the Taylor axis is a recurrence and the tile
            # axis feeds a shared VMEM scratch (the next step needs the full h).
            # TODO(synk): a v7x megacore split of the tile axis would need a cross-core
            # h exchange (CMEM/HBM) between Taylor steps.
            dimension_semantics=("arbitrary", "arbitrary"),
            vmem_limit_bytes=vmem_limit,
        ),
        cost_estimate=cost,
    )(A_p, xT, tT, w_fused, bT)

    return jnp.transpose(out_T)[:N, :]


def glorot(key, shape):
    fan_in, fan_out = shape[-2], shape[-1]
    lim = (6.0 / (fan_in + fan_out)) ** 0.5
    return jax.random.uniform(key, shape, jnp.float32, -lim, lim)


if __name__ == "__main__":
    # Small shapes: N=16 nodes, in_channels=4, out_channels=8, num_stacks K=2.
    N, F_IN, F_OUT, K, T = 16, 4, 8, 2, 1
    INIT_T = 1.0
    E = 32

    key = jax.random.PRNGKey(0)
    k_x, k_src, k_dst, k_wi, k_wr = jax.random.split(key, 5)

    x = jax.random.normal(k_x, (N, F_IN), jnp.float32)
    src = jax.random.randint(k_src, (E,), 0, N, jnp.int32)
    dst = jax.random.randint(k_dst, (E,), 0, N, jnp.int32)
    edge_index = jnp.stack([src, dst], axis=0)

    # Parameters (deterministic init, matching module shapes).
    t_param = jnp.full((1, F_IN), INIT_T, jnp.float32)          # TDConv time parameter
    init_weight = glorot(k_wi, (K, F_IN, F_OUT))                # (K, F_in, F_out)
    root_weight = glorot(k_wr, (T, K, F_IN, F_OUT))             # (T, K, F_in, F_out)
    bias = jnp.zeros((T, K, 1, F_OUT), jnp.float32)             # zeros() init

    out = arma_plus_conv(x, edge_index, t_param,
                         init_weight, root_weight[0], bias[0])
    out = jax.block_until_ready(out)
    assert out.shape == (N, F_OUT)
    print("KERNEL_OK")
</pallas_src>

<mosaic_0001>
module attributes {stable_mosaic.version = 11 : i64} {
  func.func @_arma_plus_kernel(%arg0: i32, %arg1: i32, %arg2: memref<16x16xbf16, #tpu.memory_space<vmem>>, %arg3: memref<4x16xf32, #tpu.memory_space<vmem>>, %arg4: memref<4x1xf32, #tpu.memory_space<vmem>>, %arg5: memref<2x8x4xf32, #tpu.memory_space<vmem>>, %arg6: memref<2x8x1xf32, #tpu.memory_space<vmem>>, %arg7: memref<8x16xf32, #tpu.memory_space<vmem>>, %arg8: memref<2x4x16xf32, #tpu.memory_space<vmem>>) attributes {dimension_semantics = [#tpu.dimension_semantics<arbitrary>, #tpu.dimension_semantics<arbitrary>], iteration_bounds = array<i64: 6, 1>, scalar_prefetch = 0 : i64, scratch_operands = 1 : i64, tpu.core_type = #tpu.core_type<tc>, window_params = [{transform_indices = @transform_0, window_bounds = array<i64: 16, 16>}, {pipeline_mode = #tpu.pipeline_mode<synchronous>, transform_indices = @transform_1, window_bounds = array<i64: 4, 16>}, {pipeline_mode = #tpu.pipeline_mode<synchronous>, transform_indices = @transform_2, window_bounds = array<i64: 4, 1>}, {pipeline_mode = #tpu.pipeline_mode<synchronous>, transform_indices = @transform_3, window_bounds = array<i64: 2, 8, 4>}, {pipeline_mode = #tpu.pipeline_mode<synchronous>, transform_indices = @transform_4, window_bounds = array<i64: 2, 8, 1>}, {transform_indices = @transform_5, window_bounds = array<i64: 8, 16>}]} {
    %c0 = arith.constant 0 : index
    %c0_0 = arith.constant 0 : index
    %0 = vector.load %arg4[%c0, %c0_0] : memref<4x1xf32, #tpu.memory_space<vmem>>, vector<4x1xf32>
    %c0_i32 = arith.constant 0 : i32
    %1 = arith.cmpi eq, %arg0, %c0_i32 : i32
    %c0_i32_1 = arith.constant 0 : i32
    %2 = arith.cmpi eq, %arg1, %c0_i32_1 : i32
    %3 = arith.andi %1, %2 : i1
    %4 = arith.extui %3 : i1 to i32
    %c0_i32_2 = arith.constant 0 : i32
    %5 = arith.cmpi ne, %4, %c0_i32_2 : i32
    scf.if %5 {
      %c0_15 = arith.constant 0 : index
      %c0_16 = arith.constant 0 : index
      %30 = vector.load %arg3[%c0_15, %c0_16] : memref<4x16xf32, #tpu.memory_space<vmem>>, vector<4x16xf32>
      %c1 = arith.constant 1 : index
      %c0_17 = arith.constant 0 : index
      %c0_18 = arith.constant 0 : index
      %31 = vector.load %arg8[%c1, %c0_17, %c0_18] : memref<2x4x16xf32, #tpu.memory_space<vmem>>, vector<1x4x16xf32>
      %32 = vector.shape_cast %31 : vector<1x4x16xf32> to vector<4x16xf32>
      %33 = vector.shape_cast %30 : vector<4x16xf32> to vector<1x4x16xf32>
      tpu.vector_store %arg8[%c1, %c0_17, %c0_18], %33 {strides = array<i32>} : memref<2x4x16xf32, #tpu.memory_space<vmem>>, vector<1x4x16xf32>,
    } else {
    }
    %c1_i32 = arith.constant 1 : i32
    %6 = arith.addi %arg0, %c1_i32 : i32
    %c1_i32_3 = arith.constant 1 : i32
    %7 = arith.andi %6, %c1_i32_3 : i32
    %c1_i32_4 = arith.constant 1 : i32
    %8 = arith.andi %arg0, %c1_i32_4 : i32
    %9 = arith.index_cast %7 : i32 to index
    %c0_5 = arith.constant 0 : index
    %c0_6 = arith.constant 0 : index
    %10 = vector.load %arg8[%9, %c0_5, %c0_6] : memref<2x4x16xf32, #tpu.memory_space<vmem>>, vector<1x4x16xf32>
    %11 = vector.shape_cast %10 : vector<1x4x16xf32> to vector<4x16xf32>
    %12 = arith.truncf %11 : vector<4x16xf32> to vector<4x16xbf16>
    %c0_7 = arith.constant 0 : index
    %c0_8 = arith.constant 0 : index
    %13 = vector.load %arg2[%c0_7, %c0_8] : memref<16x16xbf16, #tpu.memory_space<vmem>>, vector<16x16xbf16>
    %cst = arith.constant dense<0.000000e+00> : vector<4x16xf32>
    %14 = tpu.matmul %12, %13, %cst {dimension_numbers = #tpu.dot_dimension_numbers<[1], [0], [0], [1], [0, 0, 1, 1], [], []>} : vector<4x16xbf16>, vector<16x16xbf16>, vector<4x16xf32> -> vector<4x16xf32>
    %c0_9 = arith.constant 0 : index
    %c0_10 = arith.constant 0 : index
    %15 = vector.load %arg3[%c0_9, %c0_10] : memref<4x16xf32, #tpu.memory_space<vmem>>, vector<4x16xf32>
    %16 = arith.sitofp %arg0 : i32 to f32
    %cst_11 = arith.constant 6.000000e+00 : f32
    %17 = arith.subf %cst_11, %16 : f32
    %18 = vector.broadcast %17 : f32 to vector<4x1xf32>
    %19 = arith.divf %0, %18 : vector<4x1xf32>
    %20 = vector.broadcast %19 : vector<4x1xf32> to vector<4x16xf32>
    %21 = arith.mulf %20, %14 : vector<4x16xf32>
    %22 = arith.addf %15, %21 : vector<4x16xf32>
    %23 = arith.index_cast %8 : i32 to index
    %c0_12 = arith.constant 0 : index
    %c0_13 = arith.constant 0 : index
    %24 = vector.load %arg8[%23, %c0_12, %c0_13] : memref<2x4x16xf32, #tpu.memory_space<vmem>>, vector<1x4x16xf32>
    %25 = vector.shape_cast %24 : vector<1x4x16xf32> to vector<4x16xf32>
    %26 = vector.shape_cast %22 : vector<4x16xf32> to vector<1x4x16xf32>
    tpu.vector_store %arg8[%23, %c0_12, %c0_13], %26 {strides = array<i32>} : memref<2x4x16xf32, #tpu.memory_space<vmem>>, vector<1x4x16xf32>,
    %c5_i32 = arith.constant 5 : i32
    %27 = arith.cmpi eq, %arg0, %c5_i32 : i32
    %28 = arith.extui %27 : i1 to i32
    %c0_i32_14 = arith.constant 0 : i32
    %29 = arith.cmpi ne, %28, %c0_i32_14 : i32
    scf.if %29 {
      %cst_15 = arith.constant 0.000000e+00 : f32
      %30 = vector.broadcast %cst_15 : f32 to vector<4x1xf32>
      %31 = arith.subf %30, %0 : vector<4x1xf32>
      %32 = math.exp %31 : vector<4x1xf32>
      %33 = vector.broadcast %32 : vector<4x1xf32> to vector<4x16xf32>
      %34 = arith.mulf %33, %22 : vector<4x16xf32>
      %cst_16 = arith.constant 0.000000e+00 : f32
      %35 = vector.broadcast %cst_16 : f32 to vector<8x16xf32>
      %c0_17 = arith.constant 0 : index
      %c0_18 = arith.constant 0 : index
      %c0_19 = arith.constant 0 : index
      %36 = vector.load %arg5[%c0_17, %c0_18, %c0_19] : memref<2x8x4xf32, #tpu.memory_space<vmem>>, vector<1x8x4xf32>
      %37 = vector.shape_cast %36 : vector<1x8x4xf32> to vector<8x4xf32>
      %cst_20 = arith.constant dense<0.000000e+00> : vector<8x16xf32>
      %38 = tpu.matmul %37, %34, %cst_20 {dimension_numbers = #tpu.dot_dimension_numbers<[1], [0], [0], [1], [0, 0, 1, 1], [], []>} : vector<8x4xf32>, vector<4x16xf32>, vector<8x16xf32> -> vector<8x16xf32>
      %c0_21 = arith.constant 0 : index
      %c0_22 = arith.constant 0 : index
      %c0_23 = arith.constant 0 : index
      %39 = vector.load %arg6[%c0_21, %c0_22, %c0_23] : memref<2x8x1xf32, #tpu.memory_space<vmem>>, vector<1x8x1xf32>
      %40 = vector.shape_cast %39 : vector<1x8x1xf32> to vector<8x1xf32>
      %41 = vector.broadcast %40 : vector<8x1xf32> to vector<8x16xf32>
      %42 = arith.addf %38, %41 : vector<8x16xf32>
      %cst_24 = arith.constant 0.000000e+00 : f32
      %43 = vector.broadcast %cst_24 : f32 to vector<8x16xf32>
      %44 = arith.maximumf %42, %43 : vector<8x16xf32>
      %45 = arith.addf %35, %44 : vector<8x16xf32>
      %c1 = arith.constant 1 : index
      %c0_25 = arith.constant 0 : index
      %c0_26 = arith.constant 0 : index
      %46 = vector.load %arg5[%c1, %c0_25, %c0_26] : memref<2x8x4xf32, #tpu.memory_space<vmem>>, vector<1x8x4xf32>
      %47 = vector.shape_cast %46 : vector<1x8x4xf32> to vector<8x4xf32>
      %cst_27 = arith.constant dense<0.000000e+00> : vector<8x16xf32>
      %48 = tpu.matmul %47, %34, %cst_27 {dimension_numbers = #tpu.dot_dimension_numbers<[1], [0], [0], [1], [0, 0, 1, 1], [], []>} : vector<8x4xf32>, vector<4x16xf32>, vector<8x16xf32> -> vector<8x16xf32>
      %c1_28 = arith.constant 1 : index
      %c0_29 = arith.constant 0 : index
      %c0_30 = arith.constant 0 : index
      %49 = vector.load %arg6[%c1_28, %c0_29, %c0_30] : memref<2x8x1xf32, #tpu.memory_space<vmem>>, vector<1x8x1xf32>
      %50 = vector.shape_cast %49 : vector<1x8x1xf32> to vector<8x1xf32>
      %51 = vector.broadcast %50 : vector<8x1xf32> to vector<8x16xf32>
      %52 = arith.addf %48, %51 : vector<8x16xf32>
      %cst_31 = arith.constant 0.000000e+00 : f32
      %53 = vector.broadcast %cst_31 : f32 to vector<8x16xf32>
      %54 = arith.maximumf %52, %53 : vector<8x16xf32>
      %55 = arith.addf %45, %54 : vector<8x16xf32>
      %cst_32 = arith.constant 5.000000e-01 : f32
      %56 = vector.broadcast %cst_32 : f32 to vector<8x16xf32>
      %57 = arith.mulf %55, %56 : vector<8x16xf32>
      %c0_33 = arith.constant 0 : index
      %c0_34 = arith.constant 0 : index
      %58 = vector.load %arg7[%c0_33, %c0_34] : memref<8x16xf32, #tpu.memory_space<vmem>>, vector<8x16xf32>
      tpu.vector_store %arg7[%c0_33, %c0_34], %57 {strides = array<i32>} : memref<8x16xf32, #tpu.memory_space<vmem>>, vector<8x16xf32>,
    } else {
    }
    return
  }
  func.func @transform_0(%arg0: i32, %arg1: i32) -> (i32, i32) {
    %c0_i32 = arith.constant 0 : i32
    %c0_i32_0 = arith.constant 0 : i32
    return %c0_i32, %arg1 : i32, i32
  }
  func.func @transform_1(%arg0: i32, %arg1: i32) -> (i32, i32) {
    %c0_i32 = arith.constant 0 : i32
    %c0_i32_0 = arith.constant 0 : i32
    %c0_i32_1 = arith.constant 0 : i32
    return %c0_i32, %c0_i32_0 : i32, i32
  }
  func.func @transform_2(%arg0: i32, %arg1: i32) -> (i32, i32) {
    %c0_i32 = arith.constant 0 : i32
    %c0_i32_0 = arith.constant 0 : i32
    %c0_i32_1 = arith.constant 0 : i32
    return %c0_i32, %c0_i32_0 : i32, i32
  }
  func.func @transform_3(%arg0: i32, %arg1: i32) -> (i32, i32, i32) {
    %c0_i32 = arith.constant 0 : i32
    %c0_i32_0 = arith.constant 0 : i32
    %c0_i32_1 = arith.constant 0 : i32
    %c0_i32_2 = arith.constant 0 : i32
    return %c0_i32, %c0_i32_0, %c0_i32_1 : i32, i32, i32
  }
  func.func @transform_4(%arg0: i32, %arg1: i32) -> (i32, i32, i32) {
    %c0_i32 = arith.constant 0 : i32
    %c0_i32_0 = arith.constant 0 : i32
    %c0_i32_1 = arith.constant 0 : i32
    %c0_i32_2 = arith.constant 0 : i32
    return %c0_i32, %c0_i32_0, %c0_i32_1 : i32, i32, i32
  }
  func.func @transform_5(%arg0: i32, %arg1: i32) -> (i32, i32) {
    %c0_i32 = arith.constant 0 : i32
    %c0_i32_0 = arith.constant 0 : i32
    return %c0_i32, %arg1 : i32, i32
  }
}

</mosaic_0001>

<bundles_post_ra>
// kernel: tpu_custom_call.1
= control target key start
LH: loop header
LB: loop body
LE: loop exit
PB: predicated region body
PF: predicated region fallthrough
CT: control target
= control target key end

     0   :  { %10 = vsyncpa [#allocation4], 0  ;;  %s744_s18 = smov 0   ;;  %s746_s19 = smov 0   ;;  %s833_s0 = inlined_call_operand.vmem [shape: bf16[16,16], index: 0, kind: input, shape index: {}]   ;;  %s834_s1 = inlined_call_operand.vmem [shape: f32[4,16], index: 1, kind: input, shape index: {}]   ;;  %s835_s2 = inlined_call_operand.vmem [shape: f32[4,1], index: 2, kind: input, shape index: {}]   ;;  %s836_s3 = inlined_call_operand.vmem [shape: f32[2,8,4], index: 3, kind: input, shape index: {}]   ;;  %s837_s4 = inlined_call_operand.vmem [shape: f32[2,8,1], index: 4, kind: input, shape index: {}]   ;;  %s838_s5 = inlined_call_operand.hbm [shape: f32[8,16], index: 5, kind: output, shape index: {}]  }
   0x1   :  { %s748_s20 = smov 0  }
   0x2 LB: > { %s565_s21 = sadd.s32 4294967295, %s705_s20   ;;  %s28_s22 = sadd.s32 1, %s701_s19  ;;  %s705_s20 = sphi %s748_s20, %s16_s20   ;;  %s701_s19 = sphi %s746_s19, %s841_s19   ;;  %s697_s18 = sphi %s744_s18, %s840_s18  }
   0x3   : > { %p30_p0 = scmp.ge.s32.totalorder %s28_s22, 6  ;;  %p568_p1 = scmp.ge.s32.totalorder %s705_s20, 1 }
   0x4   : > { %p199_p2 = scmp.lt.s32.totalorder %s705_s20, 7 }
   0x5   : > { %s843_s22 = smov (%p30_p0, %s28_s22), 0 }
   0x6   : > { %p200_p3 = pnand %p568_p1, %p199_p2 }
   0x7   : > { %v226_v0 = vld [vmem:[%s835_s2] sm:$0xf] (!%p200_p3)  ;;  %p227_p4 = scmp.eq.s32.totalorder (!%p200_p3), %s697_s18, 0 }
   0x8   : > { %203 = sbr.rel (%p200_p3) target bundleno = 494 (0x1ee), region = 40 }
   0xf   : > { %232 = sbr.rel (!%p227_p4) target bundleno = 22 (0x16), region = 44  ;;  %v233_v1 = vld [vmem:[%s834_s1] sm:$0xf] (%p227_p4)  ;;  %vm235_vm0 = vcmask (%p227_p4), 125952  }
  0x10   : > { %236 = vst.msk [vmem:[#allocation2 + $0x4] sm:$0xf] (%p227_p4), %vm235_vm0, %v233_v1 }
  0x16 PF: > { %v646_v2 = vld [vmem:[%s833_s0] sm:$0xff]   ;;  %s297_s29 = scvt.s32.f32 %s697_s18  ;;  %v707_v3 = vmov 0.0   ;;  %s237_s30 = sadd.s32 1, %s697_s18  ;;  %vm708_vm1 = vmmov 0   ;;  %v709_v4 = vmov 0   ;;  %vm252_vm2 = vcmask 130048  }
  0x17   : > { %592 = vmatprep.subr.bf16.mxu0 %v707_v3  ;;  %594 = vmatprep.mubr.msk.bf16.mxu0 %vm708_vm1, %v707_v3  ;;  %s238_s6 = sand.u32 1, %s237_s30  ;;  %s239_s10 = sand.u32 1, %s697_s18  ;;  %v296_v12 = vld [vmem:[%s834_s1] sm:$0xf]  ;;  %vm311_vm3 = vcmask 125952  }
  0x18   : > { %593 = vmatpush3.bf16.msra.mxu0 %v646_v2  ;;  %s298_s7 = ssub.f32 6.0, %s297_s29  ;;  %s570_s8 = sshll.u32 %s238_s6, 2  ;;  %645 = vset.pattern.permute.xlu0 %v709_v4 }
  0x19   : > { %s241_s9 = scalar_lea.vmem [#allocation2], %s570_s8  ;;  %s573_s11 = sshll.u32 %s239_s10, 2 }
  0x1a   : > { %v299_v5 = vstv %s298_s7  ;;  %v242_v6 = vld [vmem:[%s241_s9] sm:$0xf]  ;;  %s310_s14 = scalar_lea.vmem [#allocation2], %s573_s11  ;;  %p574_p5 = scmp.ne.s32.totalorder %s697_s18, 5 }
  0x1b   : > { %647 = vrcp.f32 %v299_v5  ;;  %v243_v7 = vpack.c.bf16 %v242_v6, %v242_v6  ;;  %v317_v18 = vsub.f32 (!%p574_p5), 0.0, %v226_v0  ;;  %v710_v19 = vmov (!%p574_p5), 0   ;;  %v327_v22 = vld [vmem:[%s837_s4] sm:$0xff] (!%p574_p5)  ;;  %v578_v24 = vld [vmem:[%s837_s4 + $0x8] sm:$0xff] (!%p574_p5) }
  0x1c   : > { %650 = vset.pattern.permute.xlu1 (!%p574_p5), %v710_v19  ;;  %v711_v23 = vmov (!%p574_p5), 0.0   ;;  %vm712_vm4 = vmmov (!%p574_p5), 0   ;;  %vm337_vm5 = vcmask (!%p574_p5), 1043456   ;;  %v326_v27 = vld [vmem:[%s836_s3] sm:$0xff] (!%p574_p5)  ;;  %vm333_vm6 = vcmask (!%p574_p5), 31744   ;;  %v577_v28 = vld [vmem:[%s836_s3 + $0x8] sm:$0xff] (!%p574_p5) }
  0x1d   : > { %595 = vmatmul.mubr.msk.bf16.vlgmr.msra.gmra.mrb[0].mxu0 %vm252_vm2, %v243_v7  ;;  %v318_v20 = vmul.f32 (!%p574_p5), 1.442695, %v317_v18  ;;  %598 = vmatprep.subr.mxu0 (!%p574_p5), %v711_v23 }
  0x1e   : > { %603 = vmatprep.subr.mxu1 (!%p574_p5), %v711_v23  ;;  %600 = vmatprep.mubr.msk.f32.mxu0 (!%p574_p5), %vm712_vm4, %v711_v23 }
  0x1f   : > { %651 = vpow2.f32 (!%p574_p5), %v318_v20  ;;  %605 = vmatprep.mubr.msk.f32.mxu1 (!%p574_p5), %vm712_vm4, %v711_v23  ;;  %419 = vperm.xlu1 (!%p574_p5), %650, %v578_v24  }
  0x25   : > { %v648_v8 = vpop.eup %647 }
  0x26   : > { %v301_v9 = vmul.f32 %v648_v8, %v226_v0 }
  0x28   : > { %304 = vperm.xlu0 %645, %v301_v9  }
  0x29   : > { %v652_v21 = vpop.eup (!%p574_p5), %651 }
  0x2c   : > { %649 = vset.pattern.permute.xlu0 (!%p574_p5), %v710_v19 }
  0x2d   : > { %322 = vperm.xlu0 (!%p574_p5), %649, %v652_v21  }
  0x31   : > { %330 = vperm.xlu0 (!%p574_p5), %649, %v327_v22  }
  0x9e   : > { %v420_v29 = vpop.permute.xlu1 (!%p574_p5), %419 }
  0xa7   : > { %v305_v10 = vpop.permute.xlu0 %304 }
  0xac   : > { %v323_v25 = vpop.permute.xlu0 (!%p574_p5), %322 }
  0xb0   : > { %v331_v30 = vpop.permute.xlu0 (!%p574_p5), %330 }
  0xef   : > { %316 = sbr.rel (%p574_p5) target bundleno = 469 (0x1d5), region = 48 }
  0xf0   : > { %v290_v11 = vpop.f32.mrb[0].mxu0 }
  0xf1   : > { %v307_v13 = vmul.f32 %v305_v10, %v290_v11  ;;  %v596_v14 = vpop.f32.mrb[1].mxu0 }
  0xf2   : > { %v293_v15 = vpop.f32.mrb[2].mxu0 }
  0xf3   : > { %v308_v16 = vadd.f32 %v307_v13, %v296_v12  ;;  %v597_v17 = vpop.f32.mrb[3].mxu0 }
  0xf5   : > { %312 = vst.msk [vmem:[%s310_s14] sm:$0xf] %vm311_vm3, %v308_v16  ;;  %v325_v26 = vmul.f32 (!%p574_p5), %v323_v25, %v308_v16 }
  0xf7   : > { %599 = vmatpush3.msk.msra.mxu0 %vm337_vm5, %v325_v26  ;;  %604 = vmatpush3.msk.msra.mxu1 %vm337_vm5, %v325_v26 }
  0xf8   : > { %601 = vmatmul.mubr.msk.f32.vlgmr.msra.gmra.mrb[0].mxu0 %vm333_vm6, %v326_v27  ;;  %606 = vmatmul.mubr.msk.f32.vlgmr.msra.gmra.mrb[0].mxu1 %vm333_vm6, %v577_v28 }
 0x1cb   : > { %v407_v31 = vpop.f32.mrb[0].mxu0  ;;  %v491_v32 = vpop.f32.mrb[0].mxu1 }
 0x1cc   : > { %v408_v33 = vadd.f32 %v407_v31, %v331_v30  ;;  %v492_v34 = vadd.f32 %v491_v32, %v420_v29  ;;  %v602_v35 = vpop.f32.mrb[1].mxu0  ;;  %v607_v36 = vpop.f32.mrb[1].mxu1 }
 0x1ce   : > { %v411_v37 = vmax.f32 %v408_v33, 0.0  ;;  %v495_v38 = vmax.f32 %v492_v34, 0.0 }
 0x1d0   : > { %v496_v39 = vadd.f32 %v495_v38, %v411_v37 }
 0x1d2   : > { %v497_v40 = vmul.f32 0.5, %v496_v39 }
 0x1d4   : > { %498 = vst.msk [vmem:[#allocation3] sm:$0xff] %vm252_vm2, %v497_v40 }
 0x1d5 PF: > { %p798_p6 = scmp.eq.s32.totalorder %s565_s21, 5  ;;  %s713_s28 = smov [#allocation3]  }
 0x1d6   : > { %s508_s29 = sshll.u32 %s713_s28, 4  ;;  %s509_s29 = int_to_ptr.vmem [resolvable:$true] %s508_s29 }
 0x1d7   : > { %s653_s30 = scalar_lea.vmem %s509_s29, 128  ;;  %p660_p10 = scmp.lt.s32.totalorder %s509_s29, %s509_s29 }
 0x1d8   : > { %p654_p7 = scmp.ne.s32.totalorder %s509_s29, %s653_s30  ;;  %p661_p11 = scmp.lt.s32.totalorder %s653_s30, %s653_s30 }
 0x1da   : > { %p655_p8 = pnand %p654_p7, %p798_p6  ;;  %p662_p12 = por %p661_p11, %p660_p10 }
 0x1dc   : > { %p656_p9 = pneg %p655_p8 }
 0x1de   : > { %p663_p13 = pnand %p662_p12, %p656_p9 }
 0x1e0   : > { %666 = shalt.err (!%p663_p13)
}
 0x1e1   : > { %s667_s21 = scalar_lea.hbm %s838_s5, 128 }
 0x1e2   : > { %p668_p0 = scmp.ne.s32.totalorder %s838_s5, %s667_s21  ;;  %p673_p3 = scmp.lt.u32.totalorder %s667_s21, %s838_s5 }
 0x1e4   : > { %p669_p1 = pnand %p668_p0, %p798_p6 }
 0x1e6   : > { %p670_p2 = pneg %p669_p1 }
 0x1e8   : > { %p675_p4 = pnand %p673_p3, %p670_p2 }
 0x1ea   : > { %678 = shalt.err (!%p675_p4)
}
 0x1eb   : > { %609 = dma.vmem_to_hbm [thread:$0]  (%p798_p6), %s509_s29, 128, %s838_s5, [#allocation4]  }
 0x1ec   : > { %692 = dma.done.wait (%p798_p6), [#allocation4], 128  }
 0x1ed   : > { %694 = vsyncadd (%p798_p6), [#allocation4], 4294967168 }
 0x1ee PF: > { %s16_s20 = sadd.s32 1, %s705_s20   ;;  %s840_s18 = smov %s701_s19 }
 0x1ef   : > { %p13_p5 = scmp.ge.s32.totalorder %s16_s20, 8   ;;  %s841_s19 = smov %s843_s22 }
 0x1f1   :  { %15 = sbr.rel (!%p13_p5) target bundleno = 2 (0x2), region = 81 }
 0x1f8   :  { %521 = vsyncpa [#allocation4], 1 }
 0x1f9   :  { %523 = vsyncpa [#allocation4 + $0x1], 1 }

</bundles_post_ra>
